<compile_context>
chip_gen: v7x
topology: tpu7x:2x2x1
jax: 0.10.0
libtpu: 0.0.40
codegen_flags: <defaults>
</compile_context>

<pallas_src>
import functools

import jax
import jax.numpy as jnp
from jax.experimental import pallas as pl
from jax.experimental.pallas import tpu as pltpu

IN_FEATURES = 48 * 48   # 2304
HIDDEN = 100
HIDDEN_PAD = 128        # lane-aligned hidden width
OUT_FEATURES = 7
OUT_PAD = 128           # lane-dense logits / output slab
_NEG_PAD = -1e30        # bias on padded output lanes -> exp() == 0 exactly


def _mlp_softmax_kernel(x_ref, w1_ref, b1_ref, w2_ref, b2_ref, o_ref):
    # Hidden layer: (TB, 2304) @ (2304, 128) on the MXU in bf16, f32 accumulate.
    # Padded hidden lanes are exactly zero (zero W1 cols, zero b1 entries), so
    # tanh(0)=0 and the matching zero rows of W2 contribute nothing below.
    xb = x_ref[...].astype(jnp.bfloat16)
    h = jnp.dot(xb, w1_ref[...], preferred_element_type=jnp.float32)
    h = jnp.tanh(h + b1_ref[...])

    # Output layer (tiny, kept in f32): (TB, 128) @ (128, 128) + (1, 128).
    logits = jnp.dot(h, w2_ref[...], preferred_element_type=jnp.float32) + b2_ref[...]

    # Numerically-stable softmax along the feature axis.  Padded lanes carry a
    # -1e30 bias so exp()==0 and they never perturb the 7 real classes.
    m = jnp.max(logits, axis=-1, keepdims=True)
    e = jnp.exp(logits - m)
    denom = jnp.sum(e, axis=-1, keepdims=True)
    o_ref[...] = (e / denom).astype(o_ref.dtype)   # exact division: rows sum to 1


def _round_up(n, m):
    return ((n + m - 1) // m) * m


def _choose_batch_tile(B, batch_tile):
    """Balanced batch tiles; prefer an even number of grid steps (>=2) so both
    v7x TensorCores get work under dimension_semantics=("parallel",)."""
    n = max(1, (B + batch_tile - 1) // batch_tile)
    if B >= 16:                 # enough rows for two >=8-row tiles
        n = max(n, 2)
        if n % 2:
            n += 1              # even step count -> balanced across the two TCs
    return _round_up((B + n - 1) // n, 8)


def prepare_params(w1_t, b1, w2_t, b2):
    """One-time weight prep (pad + cast), hoisted out of the per-call path.

    w1_t: (2304, 100)  nn.Linear hidden weight, pre-transposed to (in, out)
    b1:   (100,) or (1, 100)
    w2_t: (100, 7)
    b2:   (7,) or (1, 7)
    """
    w1_t = jnp.asarray(w1_t, jnp.float32)
    w2_t = jnp.asarray(w2_t, jnp.float32)
    b1 = jnp.asarray(b1, jnp.float32).reshape(1, -1)
    b2 = jnp.asarray(b2, jnp.float32).reshape(1, -1)
    pad_h = HIDDEN_PAD - w1_t.shape[1]
    pad_o = OUT_PAD - w2_t.shape[1]
    w1_p = jnp.pad(w1_t, ((0, 0), (0, pad_h))).astype(jnp.bfloat16)  # bf16 MXU operand
    b1_p = jnp.pad(b1, ((0, 0), (0, pad_h)))                          # pad lanes -> tanh(0)=0
    w2_p = jnp.pad(w2_t, ((0, pad_h), (0, pad_o)))                    # zero rows/cols, f32
    b2_p = jnp.pad(b2, ((0, 0), (0, pad_o)), constant_values=_NEG_PAD)
    return w1_p, b1_p, w2_p, b2_p


@functools.partial(jax.jit, static_argnames=("batch_tile",))
def mlp_softmax(x, w1_p, b1_p, w2_p, b2_p, *, batch_tile=1024):
    """Fused softmax(tanh(x @ W1 + b1) @ W2 + b2, axis=-1).  Params must come
    from prepare_params (already padded/cast)."""
    B = x.shape[0]
    assert x.shape[1] == IN_FEATURES
    assert w1_p.shape == (IN_FEATURES, HIDDEN_PAD)
    assert b1_p.shape == (1, HIDDEN_PAD)
    assert w2_p.shape == (HIDDEN_PAD, OUT_PAD)
    assert b2_p.shape == (1, OUT_PAD)

    tb = _choose_batch_tile(B, batch_tile)
    grid = (pl.cdiv(B, tb),)

    cost = pl.CostEstimate(
        flops=2 * B * IN_FEATURES * HIDDEN_PAD + 2 * B * HIDDEN_PAD * OUT_PAD,
        transcendentals=B * (HIDDEN_PAD + OUT_PAD),
        bytes_accessed=int(x.size * x.dtype.itemsize
                           + w1_p.size * 2
                           + (b1_p.size + w2_p.size + b2_p.size) * 4
                           + B * OUT_PAD * 4),
    )

    # VMEM: double-buffered x tiles dominate; weights (<2 MiB) stay resident.
    # ~37 MiB at tb=1024 -> fits v7x's 64 MiB and is trivial on v5e/v6e.
    vmem_limit = int(2 * tb * IN_FEATURES * x.dtype.itemsize   # x double-buffer
                     + 2 * tb * OUT_PAD * 4                    # out double-buffer
                     + tb * IN_FEATURES * 2                    # in-kernel bf16 x copy
                     + (12 << 20))                             # weights + temps + headroom
    vmem_limit = min(vmem_limit, 100 << 20)

    out = pl.pallas_call(
        _mlp_softmax_kernel,
        out_shape=jax.ShapeDtypeStruct((B, OUT_PAD), jnp.float32),
        grid=grid,
        in_specs=[
            pl.BlockSpec((tb, IN_FEATURES), lambda i: (i, 0)),          # x streams
            pl.BlockSpec((IN_FEATURES, HIDDEN_PAD), lambda i: (0, 0)),  # W1 resident (bf16)
            pl.BlockSpec((1, HIDDEN_PAD), lambda i: (0, 0)),            # b1 resident
            pl.BlockSpec((HIDDEN_PAD, OUT_PAD), lambda i: (0, 0)),      # W2 resident
            pl.BlockSpec((1, OUT_PAD), lambda i: (0, 0)),               # b2 resident
        ],
        out_specs=pl.BlockSpec((tb, OUT_PAD), lambda i: (i, 0)),        # lane-dense stores
        compiler_params=pltpu.CompilerParams(
            dimension_semantics=("parallel",),   # megacore sharding on v7x
            vmem_limit_bytes=vmem_limit,
        ),
        cost_estimate=cost,
    )(x, w1_p, b1_p, w2_p, b2_p)

    return out[:, :OUT_FEATURES]


def init_params(key):
    """Deterministic init mimicking nn.Linear's uniform(-1/sqrt(fan_in), ...)."""
    k1, k2, k3, k4 = jax.random.split(key, 4)
    bound1 = 1.0 / jnp.sqrt(IN_FEATURES)
    bound2 = 1.0 / jnp.sqrt(HIDDEN)
    # Stored already transposed to (in, out) for the kernel.
    w1_t = jax.random.uniform(k1, (IN_FEATURES, HIDDEN), jnp.float32, -bound1, bound1)
    b1 = jax.random.uniform(k2, (1, HIDDEN), jnp.float32, -bound1, bound1)
    w2_t = jax.random.uniform(k3, (HIDDEN, OUT_FEATURES), jnp.float32, -bound2, bound2)
    b2 = jax.random.uniform(k4, (1, OUT_FEATURES), jnp.float32, -bound2, bound2)
    return w1_t, b1, w2_t, b2


if __name__ == "__main__":
    key = jax.random.PRNGKey(0)
    pkey, xkey = jax.random.split(key)
    w1_t, b1, w2_t, b2 = init_params(pkey)
    w1_p, b1_p, w2_p, b2_p = prepare_params(w1_t, b1, w2_t, b2)   # one-time prep

    B = 16  # small batch: exercises the 2-step (balanced / megacore) grid path
    x = jax.random.normal(xkey, (B, IN_FEATURES), jnp.float32)

    out = jax.block_until_ready(mlp_softmax(x, w1_p, b1_p, w2_p, b2_p))
    assert out.shape == (B, OUT_FEATURES)

    # Reference following the same precision path (bf16 first matmul, f32 accum).
    h_ref = jnp.tanh(jnp.dot(x.astype(jnp.bfloat16), w1_t.astype(jnp.bfloat16),
                             preferred_element_type=jnp.float32) + b1)
    ref = jax.nn.softmax(h_ref @ w2_t + b2, axis=-1)
    assert jnp.allclose(out, ref, atol=2e-3, rtol=2e-3)

    # Full-f32 module reference: bf16 x/W1 perturbs logits by O(1e-3) here.
    ref32 = jax.nn.softmax(jnp.tanh(x @ w1_t + b1) @ w2_t + b2, axis=-1)
    assert jnp.allclose(out, ref32, atol=2e-2, rtol=2e-2)

    # Softmax rows sum to 1 (exact division in the kernel).
    assert jnp.allclose(jnp.sum(out, axis=-1), 1.0, atol=1e-4)

    print("KERNEL_OK")
</pallas_src>

<mosaic_0001>
module attributes {stable_mosaic.version = 11 : i64} {
  func.func @_mlp_softmax_kernel(%arg0: i32, %arg1: memref<8x2304xf32, #tpu.memory_space<vmem>>, %arg2: memref<2304x128xbf16, #tpu.memory_space<vmem>>, %arg3: memref<1x128xf32, #tpu.memory_space<vmem>>, %arg4: memref<128x128xf32, #tpu.memory_space<vmem>>, %arg5: memref<1x128xf32, #tpu.memory_space<vmem>>, %arg6: memref<8x128xf32, #tpu.memory_space<vmem>>) attributes {dimension_semantics = [#tpu.dimension_semantics<parallel>], iteration_bounds = array<i64: 2>, scalar_prefetch = 0 : i64, scratch_operands = 0 : i64, tpu.core_type = #tpu.core_type<tc>, window_params = [{transform_indices = @transform_0, window_bounds = array<i64: 8, 2304>}, {pipeline_mode = #tpu.pipeline_mode<synchronous>, transform_indices = @transform_1, window_bounds = array<i64: 2304, 128>}, {pipeline_mode = #tpu.pipeline_mode<synchronous>, transform_indices = @transform_2, window_bounds = array<i64: 1, 128>}, {pipeline_mode = #tpu.pipeline_mode<synchronous>, transform_indices = @transform_3, window_bounds = array<i64: 128, 128>}, {pipeline_mode = #tpu.pipeline_mode<synchronous>, transform_indices = @transform_4, window_bounds = array<i64: 1, 128>}, {transform_indices = @transform_5, window_bounds = array<i64: 8, 128>}]} {
    %c0 = arith.constant 0 : index
    %c0_0 = arith.constant 0 : index
    %0 = vector.load %arg1[%c0, %c0_0] : memref<8x2304xf32, #tpu.memory_space<vmem>>, vector<8x2304xf32>
    %1 = arith.truncf %0 : vector<8x2304xf32> to vector<8x2304xbf16>
    %c0_1 = arith.constant 0 : index
    %c0_2 = arith.constant 0 : index
    %2 = vector.load %arg2[%c0_1, %c0_2] : memref<2304x128xbf16, #tpu.memory_space<vmem>>, vector<2304x128xbf16>
    %cst = arith.constant dense<0.000000e+00> : vector<8x128xf32>
    %3 = tpu.matmul %1, %2, %cst {dimension_numbers = #tpu.dot_dimension_numbers<[1], [0], [0], [1], [0, 0, 1, 1], [], []>} : vector<8x2304xbf16>, vector<2304x128xbf16>, vector<8x128xf32> -> vector<8x128xf32>
    %c0_3 = arith.constant 0 : index
    %c0_4 = arith.constant 0 : index
    %4 = vector.load %arg3[%c0_3, %c0_4] : memref<1x128xf32, #tpu.memory_space<vmem>>, vector<1x128xf32>
    %5 = vector.broadcast %4 : vector<1x128xf32> to vector<8x128xf32>
    %6 = arith.addf %3, %5 : vector<8x128xf32>
    %7 = math.tanh %6 : vector<8x128xf32>
    %c0_5 = arith.constant 0 : index
    %c0_6 = arith.constant 0 : index
    %8 = vector.load %arg4[%c0_5, %c0_6] : memref<128x128xf32, #tpu.memory_space<vmem>>, vector<128x128xf32>
    %cst_7 = arith.constant dense<0.000000e+00> : vector<8x128xf32>
    %9 = tpu.matmul %7, %8, %cst_7 {dimension_numbers = #tpu.dot_dimension_numbers<[1], [0], [0], [1], [0, 0, 1, 1], [], []>} : vector<8x128xf32>, vector<128x128xf32>, vector<8x128xf32> -> vector<8x128xf32>
    %c0_8 = arith.constant 0 : index
    %c0_9 = arith.constant 0 : index
    %10 = vector.load %arg5[%c0_8, %c0_9] : memref<1x128xf32, #tpu.memory_space<vmem>>, vector<1x128xf32>
    %11 = vector.broadcast %10 : vector<1x128xf32> to vector<8x128xf32>
    %12 = arith.addf %9, %11 : vector<8x128xf32>
    %cst_10 = arith.constant dense<0xFF800000> : vector<8xf32>
    %13 = vector.multi_reduction <maximumf>, %12, %cst_10 [1] : vector<8x128xf32> to vector<8xf32>
    %14 = vector.shape_cast %13 : vector<8xf32> to vector<8x1xf32>
    %15 = vector.broadcast %14 : vector<8x1xf32> to vector<8x128xf32>
    %16 = arith.subf %12, %15 : vector<8x128xf32>
    %17 = math.exp %16 : vector<8x128xf32>
    %cst_11 = arith.constant dense<0.000000e+00> : vector<8xf32>
    %18 = vector.multi_reduction <add>, %17, %cst_11 [1] : vector<8x128xf32> to vector<8xf32>
    %19 = vector.shape_cast %18 : vector<8xf32> to vector<8x1xf32>
    %20 = vector.broadcast %19 : vector<8x1xf32> to vector<8x128xf32>
    %21 = arith.divf %17, %20 : vector<8x128xf32>
    %c0_12 = arith.constant 0 : index
    %c0_13 = arith.constant 0 : index
    %22 = vector.load %arg6[%c0_12, %c0_13] : memref<8x128xf32, #tpu.memory_space<vmem>>, vector<8x128xf32>
    tpu.vector_store %arg6[%c0_12, %c0_13], %21 {strides = array<i32>} : memref<8x128xf32, #tpu.memory_space<vmem>>, vector<8x128xf32>,
    return
  }
  func.func @transform_0(%arg0: i32) -> (i32, i32) {
    %c0_i32 = arith.constant 0 : i32
    %c0_i32_0 = arith.constant 0 : i32
    return %arg0, %c0_i32 : i32, i32
  }
  func.func @transform_1(%arg0: i32) -> (i32, i32) {
    %c0_i32 = arith.constant 0 : i32
    %c0_i32_0 = arith.constant 0 : i32
    %c0_i32_1 = arith.constant 0 : i32
    return %c0_i32, %c0_i32_0 : i32, i32
  }
  func.func @transform_2(%arg0: i32) -> (i32, i32) {
    %c0_i32 = arith.constant 0 : i32
    %c0_i32_0 = arith.constant 0 : i32
    %c0_i32_1 = arith.constant 0 : i32
    return %c0_i32, %c0_i32_0 : i32, i32
  }
  func.func @transform_3(%arg0: i32) -> (i32, i32) {
    %c0_i32 = arith.constant 0 : i32
    %c0_i32_0 = arith.constant 0 : i32
    %c0_i32_1 = arith.constant 0 : i32
    return %c0_i32, %c0_i32_0 : i32, i32
  }
  func.func @transform_4(%arg0: i32) -> (i32, i32) {
    %c0_i32 = arith.constant 0 : i32
    %c0_i32_0 = arith.constant 0 : i32
    %c0_i32_1 = arith.constant 0 : i32
    return %c0_i32, %c0_i32_0 : i32, i32
  }
  func.func @transform_5(%arg0: i32) -> (i32, i32) {
    %c0_i32 = arith.constant 0 : i32
    %c0_i32_0 = arith.constant 0 : i32
    return %arg0, %c0_i32 : i32, i32
  }
}

</mosaic_0001>

<bundles_post_ra>
// kernel: mlp_softmax.1
= control target key start
LH: loop header
LB: loop body
LE: loop exit
PB: predicated region body
PF: predicated region fallthrough
CT: control target
= control target key end

     0   :  { %10 = vsyncpa [#allocation3], 0  ;;  %s3030_s0 = inlined_call_operand.hbm [shape: f32[16,2304], index: 0, kind: input, shape index: {}]   ;;  %s3031_s1 = inlined_call_operand.hbm [shape: bf16[2304,128], index: 1, kind: input, shape index: {}]   ;;  %s3032_s2 = inlined_call_operand.vmem [shape: f32[1,128], index: 2, kind: input, shape index: {}]   ;;  %s3033_s3 = inlined_call_operand.hbm [shape: f32[128,128], index: 3, kind: input, shape index: {}]   ;;  %s3034_s4 = inlined_call_operand.vmem [shape: f32[1,128], index: 4, kind: input, shape index: {}]   ;;  %s3035_s5 = inlined_call_operand.vmem [shape: f32[16,128], index: 5, kind: output, shape index: {}]  }
   0x1   :  { %12 = vsyncpa [#allocation3 + $0x1], 0 }
   0x2   :  { %13 = vsyncpa [#allocation5], 0  ;;  %s2832_s18 = smov 0   ;;  %s2834_s19 = smov 0  }
   0x3   :  { %s2836_s20 = smov 0   ;;  %s2838_s21 = smov 0  }
   0x4 LB: > { %s2851_s22 = sadd.s32 4294967295, %s2790_s21   ;;  %p39_p0 = scmp.ne.s32.totalorder %s2782_s19, %s2778_s18  ;;  %s2790_s21 = sphi %s2838_s21, %s3050_s21   ;;  %s2786_s20 = sphi %s2836_s20, %s3049_s20   ;;  %s2782_s19 = sphi %s2834_s19, %s3048_s19   ;;  %s2778_s18 = sphi %s2832_s18, %s3047_s18  }
   0x5   : > { %p3036_p1 = scmp.eq.s32.totalorder %s2851_s22, 0  ;;  %p2015_p2 = scmp.ge.s32.totalorder %s2790_s21, 1 }
   0x6   : > { %p160_p3 = scmp.lt.s32.totalorder %s2790_s21, 3  ;;  %s2792_s25 = smov [#allocation4]  }
   0x7   : > { %p2859_p4 = por %p3036_p1, %p39_p0  ;;  %s172_s26 = sshll.u32 %s2792_s25, 4  ;;  %s173_s26 = int_to_ptr.vmem [resolvable:$true] %s172_s26 }
   0x8   : > { %p2863_p5 = pnand %p2015_p2, %p160_p3  ;;  %s2793_s28 = smov [#allocation6]  }
   0x9   : > { %s3039_s23 = scalar_select %p2859_p4, 1, 0 }
   0xa   : > { %s3040_s24 = scalar_select %p2863_p5, 1, 0 }
   0xb   : > { %p2459_p6 = pneg %p2863_p5  ;;  %s188_s29 = sshll.u32 %s2793_s28, 4  ;;  %s2875_s29 = int_to_ptr.vmem [resolvable:$true] %s188_s29 }
   0xc   : > { %s2666_s7 = scalar_lea.hbm %s3031_s1, 18432 }
   0xd   : > { %p2871_p7 = pnand %p2459_p6, %p3036_p1  ;;  %p2667_p8 = scmp.ne.s32.totalorder %s3031_s1, %s2666_s7 }
   0xe   : > { %p2673_p12 = scmp.lt.u32.totalorder %s2666_s7, %s3031_s1 }
   0xf   : > { %p2668_p9 = pneg %p2871_p7 }
  0x11   : > { %p2669_p10 = pnand %p2668_p9, %p2667_p8 }
  0x13   : > { %p2670_p11 = pneg %p2669_p10 }
  0x15   : > { %p2675_p13 = pnand %p2673_p12, %p2670_p11 }
  0x17   : > { %2678 = shalt.err (!%p2675_p13)
}
  0x18   : > { %s2679_s12 = scalar_lea.vmem %s173_s26, 18432  ;;  %p2687_p6 = scmp.lt.s32.totalorder %s173_s26, %s173_s26 }
  0x19   : > { %p2680_p0 = scmp.ne.s32.totalorder %s173_s26, %s2679_s12  ;;  %p2688_p1 = scmp.lt.s32.totalorder %s2679_s12, %s2679_s12 }
  0x1b   : > { %p2682_p2 = pnand %p2680_p0, %p2668_p9  ;;  %p2689_p4 = por %p2688_p1, %p2687_p6 }
  0x1d   : > { %p2683_p3 = pneg %p2682_p2 }
  0x1f   : > { %p2690_p5 = pnand %p2689_p4, %p2683_p3 }
  0x21   : > { %2693 = shalt.err (!%p2690_p5)
}
  0x22   : > { %s2794_s13 = smov 64   ;;  %s2795_s14 = smov 4  }
  0x23   : > { %2462 = dma.hbm_to_vmem [thread:$0]  (!%p2871_p7), %s3031_s1, 18432, %s173_s26, [#allocation5], %s2794_s13, %s2794_s13, %s2795_s14  }
  0x24   : > { %s2694_s25 = scalar_lea.hbm %s3033_s3, 2048 }
  0x25   : > { %p2695_p8 = scmp.ne.s32.totalorder %s3033_s3, %s2694_s25  ;;  %p2701_p5 = scmp.lt.u32.totalorder %s2694_s25, %s3033_s3 }
  0x27   : > { %p2697_p1 = pnand %p2695_p8, %p2668_p9 }
  0x29   : > { %p2698_p4 = pneg %p2697_p1 }
  0x2b   : > { %p2703_p10 = pnand %p2701_p5, %p2698_p4 }
  0x2d   : > { %2706 = shalt.err (!%p2703_p10)
}
  0x2e   : > { %s2707_s26 = scalar_lea.vmem %s2875_s29, 2048  ;;  %p2715_p0 = scmp.lt.s32.totalorder %s2875_s29, %s2875_s29 }
  0x2f   : > { %p2708_p11 = scmp.ne.s32.totalorder %s2875_s29, %s2707_s26  ;;  %p2716_p2 = scmp.lt.s32.totalorder %s2707_s26, %s2707_s26 }
  0x31   : > { %p2710_p12 = pnand %p2708_p11, %p2668_p9  ;;  %p2717_p3 = por %p2716_p2, %p2715_p0 }
  0x33   : > { %p2711_p13 = pneg %p2710_p12 }
  0x35   : > { %p2718_p6 = pnand %p2717_p3, %p2711_p13 }
  0x37   : > { %2721 = shalt.err (!%p2718_p6)
}
  0x38   : > { %s2796_s8 = smov 128   ;;  %s2797_s9 = smov 8  }
  0x39   : > { %2465 = dma.hbm_to_vmem [thread:$0]  (!%p2871_p7), %s3033_s3, 2048, %s2875_s29, [#allocation5], %s2796_s8, %s2796_s8, %s2797_s9  }
  0x3a   : > { %s2925_s12 = sadd.s32 1, %s2790_s21   ;;  %s26_s14 = sadd.s32 1, %s2786_s20 }
  0x3b   : > { %s23_s13 = ssub.s32 %s2790_s21, %s2925_s12  ;;  %p33_p8 = scmp.ne.s32.totalorder %s2786_s20, %s2782_s19 }
  0x3c   : > { %p24_p9 = scmp.eq.s32.totalorder %s23_s13, 0  ;;  %p34_p1 = scmp.eq.s32.totalorder %s2790_s21, 0 }
  0x3d   : > { %p2472_p5 = scmp.lt.s32.totalorder %s2790_s21, 2  ;;  %s205_s16 = sand.u32 1, %s2786_s20  }
  0x3e   : > { %s2934_s15 = scalar_select %p24_p9, %s2786_s20, %s26_s14  }
  0x3f   : > { %p35_p4 = por %p34_p1, %p33_p8  ;;  %s2447_s17 = smul.u32 2304, %s2790_s21 }
  0x40   : > { %s2446_s18 = smul.u32 144, %s205_s16  ;;  %s206_s21 = scalar_lea.sflag [#allocation3], %s205_s16 }
  0x41   : > { %p2939_p10 = pnand %p2472_p5, %p35_p4  ;;  %s2946_s28 = scalar_lea.hbm %s3030_s0, %s2447_s17 }
  0x42   : > { %s209_s30 = scalar_lea.vmem [#allocation2], %s2446_s18  ;;  %s2722_s7 = scalar_lea.hbm %s2946_s28, 2304 }
  0x43   : > { %s217_s6 = sshll.u32 %s209_s30, 4  ;;  %p2723_p7 = scmp.ne.s32.totalorder %s2946_s28, %s2722_s7  ;;  %s2948_s6 = int_to_ptr.vmem [resolvable:$true] %s217_s6 }
  0x44   : > { %p2724_p11 = pneg %p2939_p10  ;;  %s2727_s9 = scalar_lea.hbm %s3030_s0, 4608 }
  0x45   : > { %p2728_p0 = scmp.lt.u32.totalorder %s2946_s28, %s3030_s0  ;;  %p2729_p2 = scmp.lt.u32.totalorder %s2727_s9, %s2722_s7 }
  0x46   : > { %p2725_p12 = pnand %p2724_p11, %p2723_p7  ;;  %p2731_p6 = scmp.lt.u32.totalorder %s2722_s7, %s2946_s28 }
  0x47   : > { %p2730_p3 = por %p2729_p2, %p2728_p0 }
  0x48   : > { %p2726_p13 = pneg %p2725_p12 }
  0x49   : > { %p2732_p9 = por %p2731_p6, %p2730_p3 }
  0x4b   : > { %p2733_p8 = pnand %p2732_p9, %p2726_p13 }
  0x4d   : > { %2736 = shalt.err (!%p2733_p8)
}
  0x4e   : > { %s2737_s13 = scalar_lea.vmem %s2948_s6, 2304  ;;  %s2798_s14 = smov [#allocation2]  }
  0x4f   : > { %p2738_p1 = scmp.ne.s32.totalorder %s2948_s6, %s2737_s13  ;;  %s2742_s16 = sshll.u32 %s2798_s14, 4  ;;  %s2743_s16 = int_to_ptr.vmem [resolvable:$false] %s2742_s16 }
  0x50   : > { %s2744_s17 = scalar_lea.vmem %s2743_s16, 4608  ;;  %p2745_p7 = scmp.lt.s32.totalorder %s2948_s6, %s2743_s16 }
  0x51   : > { %p2740_p4 = pnand %p2738_p1, %p2724_p11  ;;  %p2746_p12 = scmp.lt.s32.totalorder %s2744_s17, %s2737_s13 }
  0x53   : > { %p2741_p5 = pneg %p2740_p4  ;;  %p2747_p0 = por %p2746_p12, %p2745_p7 }
  0x55   : > { %p2748_p2 = pnand %p2747_p0, %p2741_p5 }
  0x57   : > { %2751 = shalt.err (!%p2748_p2)
}
  0x58   : > { %2469 = dma.hbm_to_vmem [thread:$0]  (!%p2939_p10), %s2946_s28, 2304, %s2948_s6, %s206_s21  }
  0x59   : > { %p3043_p13 = scmp.ne.s32.totalorder %s3040_s24, 0 }
  0x5a   : > { %s228_s18 = sand.u32 (!%p3043_p13), 1, %s2782_s19   ;;  %p3044_p11 = scmp.ne.s32.totalorder (!%p3043_p13), %s3039_s23, 0 }
  0x5b   : > { %226 = sbr.rel (%p3043_p13) target bundleno = 1018 (0x3fa), region = 40  ;;  %s229_s25 = scalar_lea.sflag (!%p3043_p13), [#allocation3], %s228_s18 }
  0x5c   : > { %s2448_s29 = smul.u32 (!%p3043_p13), 144, %s228_s18 }
  0x5e   : > { %s2978_s30 = scalar_lea.vmem (!%p3043_p13), [#allocation2], %s2448_s29 }
  0x62   : > { %2769 = dma.done.wait (%p3044_p11), %s229_s25, 2304  }
  0x63   : > { %2771 = vsyncadd (%p3044_p11), %s229_s25, 4294964992  ;;  %p3045_p3 = scmp.eq.s32.totalorder %s2851_s22, 0 }
  0x65   : > { %2773 = dma.done.wait (%p3045_p3), [#allocation5], 20480   ;;  %p3046_p10 = pmov %p3045_p3 }
  0x66   : > { %v2516_v0 = vld [vmem:[#allocation4 + $0x40] sm:$0xff]   ;;  %v2520_v4 = vld [vmem:[#allocation4 + $0x48] sm:$0xff]   ;;  %v2524_v8 = vld [vmem:[#allocation4 + $0x50] sm:$0xff]   ;;  %vm2800_vm0 = vmmov 0   ;;  %p266_p6 = scmp.lt.s32.totalorder %s2851_s22, 1 }
  0x67   : > { %2775 = vsyncadd (%p3046_p10), [#allocation5], 4294946816  ;;  %v2517_v1 = vld [vmem:[#allocation4] sm:$0xff]   ;;  %2172 = vmatprep.subr.bf16.mxu0 %v2516_v0  ;;  %v2521_v5 = vld [vmem:[#allocation4 + $0x8] sm:$0xff]  }
  0x68   : > { %v2518_v2 = vld [vmem:[#allocation4 + $0xc0] sm:$0xff]   ;;  %2173 = vmatpush3.bf16.msra.mxu0 %v2517_v1  ;;  %v2522_v6 = vld [vmem:[#allocation4 + $0xc8] sm:$0xff]   ;;  %v2525_v9 = vld [vmem:[#allocation4 + $0x10] sm:$0xff]   ;;  %s3052_s22 = smov (!%p266_p6, %s2851_s22), 1 }
  0x69   : > { %v2519_v3 = vld [vmem:[#allocation4 + $0x80] sm:$0xff]   ;;  %2194 = vmatprep.subr.bf16.mxu1 %v2518_v2  ;;  %2174 = vmatprep.subr.bf16.mxu0 %v2520_v4  ;;  %v2523_v7 = vld [vmem:[#allocation4 + $0x88] sm:$0xff]   ;;  %v2526_v10 = vld [vmem:[#allocation4 + $0xd0] sm:$0xff]   ;;  %s2023_s6 = sshll.u32 %s3052_s22, 3 }
  0x6a   : > { %2195 = vmatpush3.bf16.msra.mxu1 %v2519_v3  ;;  %v2527_v11 = vld [vmem:[#allocation4 + $0x90] sm:$0xff]   ;;  %v2528_v12 = vld [vmem:[#allocation4 + $0x58] sm:$0xff]   ;;  %v2532_v16 = vld [vmem:[#allocation4 + $0x60] sm:$0xff]   ;;  %s269_s26 = scalar_lea.vmem %s3035_s5, %s2023_s6 }
  0x6b   : > { %2196 = vmatprep.subr.bf16.mxu1 %v2522_v6  ;;  %v2529_v13 = vld [vmem:[#allocation4 + $0x18] sm:$0xff]   ;;  %v2533_v17 = vld [vmem:[#allocation4 + $0x20] sm:$0xff]   ;;  %v2536_v20 = vld [vmem:[#allocation4 + $0x68] sm:$0xff]  }
  0x6c   : > { %2175 = vmatpush3.bf16.msra.mxu0 %v2521_v5  ;;  %v2530_v14 = vld [vmem:[#allocation4 + $0xd8] sm:$0xff]   ;;  %v2534_v18 = vld [vmem:[#allocation4 + $0xe0] sm:$0xff]   ;;  %v2537_v21 = vld [vmem:[#allocation4 + $0x28] sm:$0xff]  }
  0x6d   : > { %2176 = vmatprep.subr.bf16.mxu0 %v2524_v8  ;;  %v2531_v15 = vld [vmem:[#allocation4 + $0x98] sm:$0xff]   ;;  %v2535_v19 = vld [vmem:[#allocation4 + $0xa0] sm:$0xff]   ;;  %v2538_v22 = vld [vmem:[#allocation4 + $0xe8] sm:$0xff]  }
  0x6e   : > { %2197 = vmatpush3.bf16.msra.mxu1 %v2523_v7  ;;  %v2539_v23 = vld [vmem:[#allocation4 + $0xa8] sm:$0xff]   ;;  %v2540_v24 = vld [vmem:[#allocation4 + $0x70] sm:$0xff]   ;;  %v2544_v28 = vld [vmem:[#allocation4 + $0x78] sm:$0xff]  }
  0x6f   : > { %2198 = vmatprep.subr.bf16.mxu1 %v2526_v10  ;;  %v2541_v25 = vld [vmem:[#allocation4 + $0x30] sm:$0xff]   ;;  %v2545_v29 = vld [vmem:[#allocation4 + $0x38] sm:$0xff]   ;;  %v2548_v36 = vld [vmem:[#allocation4 + $0x140] sm:$0xff]  }
  0x70   : > { %2177 = vmatpush3.bf16.msra.mxu0 %v2525_v9  ;;  %v2542_v26 = vld [vmem:[#allocation4 + $0xf0] sm:$0xff]   ;;  %v2546_v30 = vld [vmem:[#allocation4 + $0xf8] sm:$0xff]   ;;  %v2549_v39 = vld [vmem:[#allocation4 + $0x100] sm:$0xff]  }
  0x71   : > { %2178 = vmatprep.subr.bf16.mxu0 %v2528_v12  ;;  %v2543_v27 = vld [vmem:[#allocation4 + $0xb0] sm:$0xff]   ;;  %v272_v31 = vld [vmem:[%s2978_s30 + $0x8] sm:$0xff]  ;;  %v274_v37 = vld [vmem:[%s2978_s30 + $0x18] sm:$0xff] }
  0x72   : > { %2199 = vmatpush3.bf16.msra.mxu1 %v2527_v11  ;;  %v290_v32 = vpack.c.bf16 %v272_v31, %v272_v31  ;;  %v2547_v33 = vld [vmem:[#allocation4 + $0xb8] sm:$0xff]   ;;  %v271_v34 = vld [vmem:[%s2978_s30] sm:$0xff]  ;;  %v292_v38 = vpack.c.bf16 %v274_v37, %v274_v37  ;;  %v273_v40 = vld [vmem:[%s2978_s30 + $0x10] sm:$0xff] }
  0x73   : > { %2200 = vmatprep.subr.bf16.mxu1 %v2530_v14  ;;  %v289_v35 = vpack.c.bf16 %v271_v34, %v271_v34  ;;  %v291_v41 = vpack.c.bf16 %v273_v40, %v273_v40  ;;  %v2550_v42 = vld [vmem:[#allocation4 + $0x1c0] sm:$0xff]   ;;  %v2552_v44 = vld [vmem:[#allocation4 + $0x148] sm:$0xff]   ;;  %v2556_v48 = vld [vmem:[#allocation4 + $0x150] sm:$0xff]  }
  0x74   : > { %2179 = vmatpush3.bf16.msra.mxu0 %v2529_v13  ;;  %1498 = vmatprep.mubr.bf16.mxu0 %v290_v32  ;;  %v2551_v43 = vld [vmem:[#allocation4 + $0x180] sm:$0xff]   ;;  %v2553_v45 = vld [vmem:[#allocation4 + $0x108] sm:$0xff]   ;;  %v2557_v49 = vld [vmem:[#allocation4 + $0x110] sm:$0xff]  }
  0x75   : > { %2180 = vmatprep.subr.bf16.mxu0 %v2532_v16  ;;  %1538 = vmatprep.mubr.bf16.mxu1 %v292_v38  ;;  %v2554_v46 = vld [vmem:[#allocation4 + $0x1c8] sm:$0xff]   ;;  %v2558_v50 = vld [vmem:[#allocation4 + $0x1d0] sm:$0xff]   ;;  %v2560_v52 = vld [vmem:[#allocation4 + $0x158] sm:$0xff]  }
  0x76   : > { %2201 = vmatpush3.bf16.msra.mxu1 %v2531_v15  ;;  %v2555_v47 = vld [vmem:[#allocation4 + $0x188] sm:$0xff]   ;;  %v2559_v51 = vld [vmem:[#allocation4 + $0x190] sm:$0xff]   ;;  %v2561_v53 = vld [vmem:[#allocation4 + $0x118] sm:$0xff]  }
  0x77   : > { %2202 = vmatprep.subr.bf16.mxu1 %v2534_v18  ;;  %v2562_v54 = vld [vmem:[#allocation4 + $0x1d8] sm:$0xff]   ;;  %v2564_v56 = vld [vmem:[#allocation4 + $0x160] sm:$0xff]   ;;  %v2568_v60 = vld [vmem:[#allocation4 + $0x168] sm:$0xff]  }
  0x78   : > { %2181 = vmatpush3.bf16.msra.mxu0 %v2533_v17  ;;  %v2563_v55 = vld [vmem:[#allocation4 + $0x198] sm:$0xff]   ;;  %v2565_v57 = vld [vmem:[#allocation4 + $0x120] sm:$0xff]   ;;  %v2569_v61 = vld [vmem:[#allocation4 + $0x128] sm:$0xff]  }
  0x79   : > { %2182 = vmatprep.subr.bf16.mxu0 %v2536_v20  ;;  %v2566_v58 = vld [vmem:[#allocation4 + $0x1e0] sm:$0xff]   ;;  %v2570_v62 = vld [vmem:[#allocation4 + $0x1e8] sm:$0xff]   ;;  %v2572_v0 = vld [vmem:[#allocation4 + $0x170] sm:$0xff]  }
  0x7a   : > { %2203 = vmatpush3.bf16.msra.mxu1 %v2535_v19  ;;  %v2567_v59 = vld [vmem:[#allocation4 + $0x1a0] sm:$0xff]   ;;  %v2571_v63 = vld [vmem:[#allocation4 + $0x1a8] sm:$0xff]   ;;  %v2573_v1 = vld [vmem:[#allocation4 + $0x130] sm:$0xff]  }
  0x7b   : > { %2204 = vmatprep.subr.bf16.mxu1 %v2538_v22  ;;  %v2574_v2 = vld [vmem:[#allocation4 + $0x1f0] sm:$0xff]   ;;  %v2576_v4 = vld [vmem:[#allocation4 + $0x178] sm:$0xff]   ;;  %v2580_v12 = vld [vmem:[#allocation4 + $0x240] sm:$0xff]  }
  0x7c   : > { %2183 = vmatpush3.bf16.msra.mxu0 %v2537_v21  ;;  %v2575_v3 = vld [vmem:[#allocation4 + $0x1b0] sm:$0xff]   ;;  %v2577_v5 = vld [vmem:[#allocation4 + $0x138] sm:$0xff]   ;;  %v2581_v15 = vld [vmem:[#allocation4 + $0x200] sm:$0xff]  }
  0x7d   : > { %2184 = vmatprep.subr.bf16.mxu0 %v2540_v24  ;;  %v2578_v6 = vld [vmem:[#allocation4 + $0x1f8] sm:$0xff]   ;;  %v275_v10 = vld [vmem:[%s2978_s30 + $0x20] sm:$0xff]  ;;  %v277_v16 = vld [vmem:[%s2978_s30 + $0x30] sm:$0xff] }
  0x7e   : > { %2205 = vmatpush3.bf16.msra.mxu1 %v2539_v23  ;;  %v276_v7 = vld [vmem:[%s2978_s30 + $0x28] sm:$0xff]  ;;  %v293_v11 = vpack.c.bf16 %v275_v10, %v275_v10  ;;  %v278_v13 = vld [vmem:[%s2978_s30 + $0x38] sm:$0xff]  ;;  %v295_v17 = vpack.c.bf16 %v277_v16, %v277_v16  ;;  %v2582_v18 = vld [vmem:[#allocation4 + $0x2c0] sm:$0xff]  }
  0x7f   : > { %2206 = vmatprep.subr.bf16.mxu1 %v2542_v26  ;;  %v294_v8 = vpack.c.bf16 %v276_v7, %v276_v7  ;;  %v2579_v9 = vld [vmem:[#allocation4 + $0x1b8] sm:$0xff]   ;;  %v296_v14 = vpack.c.bf16 %v278_v13, %v278_v13  ;;  %v2583_v19 = vld [vmem:[#allocation4 + $0x280] sm:$0xff]   ;;  %v2584_v20 = vld [vmem:[#allocation4 + $0x248] sm:$0xff]  }
  0x80   : > { %2185 = vmatpush3.bf16.msra.mxu0 %v2541_v25  ;;  %v2585_v21 = vld [vmem:[#allocation4 + $0x208] sm:$0xff]   ;;  %v2588_v24 = vld [vmem:[#allocation4 + $0x250] sm:$0xff]   ;;  %v2595_v31 = vld [vmem:[#allocation4 + $0x298] sm:$0xff]  }
  0x81   : > { %2186 = vmatprep.subr.bf16.mxu0 %v2544_v28  ;;  %v2586_v22 = vld [vmem:[#allocation4 + $0x2c8] sm:$0xff]   ;;  %v2589_v25 = vld [vmem:[#allocation4 + $0x210] sm:$0xff]   ;;  %v2592_v28 = vld [vmem:[#allocation4 + $0x258] sm:$0xff]  }
  0x82   : > { %2207 = vmatpush3.bf16.msra.mxu1 %v2543_v27  ;;  %v2587_v23 = vld [vmem:[#allocation4 + $0x288] sm:$0xff]   ;;  %v2590_v26 = vld [vmem:[#allocation4 + $0x2d0] sm:$0xff]   ;;  %v2596_v32 = vld [vmem:[#allocation4 + $0x260] sm:$0xff]  }
  0x83   : > { %2208 = vmatprep.subr.bf16.mxu1 %v2546_v30  ;;  %v2591_v27 = vld [vmem:[#allocation4 + $0x290] sm:$0xff]   ;;  %v2594_v30 = vld [vmem:[#allocation4 + $0x2d8] sm:$0xff]   ;;  %v2598_v34 = vld [vmem:[#allocation4 + $0x2e0] sm:$0xff]  }
  0x84   : > { %2187 = vmatpush3.bf16.msra.mxu0 %v2545_v29  ;;  %v2593_v29 = vld [vmem:[#allocation4 + $0x218] sm:$0xff]   ;;  %v2601_v37 = vld [vmem:[#allocation4 + $0x228] sm:$0xff]   ;;  %v2604_v40 = vld [vmem:[#allocation4 + $0x270] sm:$0xff]  }
  0x85   : > { %2216 = vmatprep.subr.bf16.mxu0 %v2548_v36  ;;  %v2600_v36 = vld [vmem:[#allocation4 + $0x268] sm:$0xff]   ;;  %v2627_v7 = vld [vmem:[#allocation4 + $0x398] sm:$0xff]   ;;  %v2630_v10 = vld [vmem:[#allocation4 + $0x3e0] sm:$0xff]  }
  0x86   : > { %2209 = vmatpush3.bf16.msra.mxu1 %v2547_v33  ;;  %v2597_v33 = vld [vmem:[#allocation4 + $0x220] sm:$0xff]   ;;  %v2602_v38 = vld [vmem:[#allocation4 + $0x2e8] sm:$0xff]   ;;  %v2636_v16 = vld [vmem:[#allocation4 + $0x370] sm:$0xff]  }
  0x87   : > { %1499 = vmatmul.mubr.bf16.vlgmr.msra.gmra.mrb[0].mxu0 %v289_v35  ;;  %2238 = vmatprep.subr.bf16.mxu1 %v2550_v42  ;;  %v2599_v35 = vld [vmem:[#allocation4 + $0x2a0] sm:$0xff]   ;;  %v2606_v42 = vld [vmem:[#allocation4 + $0x2f0] sm:$0xff]   ;;  %v2633_v13 = vld [vmem:[#allocation4 + $0x328] sm:$0xff]  }
  0x88   : > { %2217 = vmatpush3.bf16.msra.mxu0 %v2549_v39  ;;  %1578 = vmatprep.mubr.bf16.mxu0 %v294_v8  ;;  %v2603_v39 = vld [vmem:[#allocation4 + $0x2a8] sm:$0xff]   ;;  %v2628_v8 = vld [vmem:[#allocation4 + $0x360] sm:$0xff]  }
  0x89   : > { %1539 = vmatmul.mubr.bf16.vlgmr.msra.gmra.mrb[0].mxu1 %v291_v41  ;;  %2218 = vmatprep.subr.bf16.mxu0 %v2552_v44  ;;  %v2605_v41 = vld [vmem:[#allocation4 + $0x230] sm:$0xff]   ;;  %v2608_v44 = vld [vmem:[#allocation4 + $0x278] sm:$0xff]  }
  0x8a   : > { %2239 = vmatpush3.bf16.msra.mxu1 %v2551_v43  ;;  %1618 = vmatprep.mubr.bf16.mxu1 %v296_v14  ;;  %v2607_v43 = vld [vmem:[#allocation4 + $0x2b0] sm:$0xff]   ;;  %v2634_v14 = vld [vmem:[#allocation4 + $0x3e8] sm:$0xff]  }
  0x8b   : > { %2240 = vmatprep.subr.bf16.mxu1 %v2554_v46  ;;  %v2610_v46 = vld [vmem:[#allocation4 + $0x2f8] sm:$0xff]  }
  0x8c   : > { %2219 = vmatpush3.bf16.msra.mxu0 %v2553_v45  ;;  %v2609_v45 = vld [vmem:[#allocation4 + $0x238] sm:$0xff]  }
  0x8d   : > { %2220 = vmatprep.subr.bf16.mxu0 %v2556_v48 }
  0x8e   : > { %2241 = vmatpush3.bf16.msra.mxu1 %v2555_v47  ;;  %v280_v47 = vld [vmem:[%s2978_s30 + $0x48] sm:$0xff] }
  0x8f   : > { %2242 = vmatprep.subr.bf16.mxu1 %v2558_v50  ;;  %v298_v48 = vpack.c.bf16 %v280_v47, %v280_v47  ;;  %v279_v50 = vld [vmem:[%s2978_s30 + $0x40] sm:$0xff] }
  0x90   : > { %2221 = vmatpush3.bf16.msra.mxu0 %v2557_v49  ;;  %v2611_v49 = vld [vmem:[#allocation4 + $0x2b8] sm:$0xff]   ;;  %v2657_v47 = vld [vmem:[#allocation4 + $0x430] sm:$0xff]  }
  0x91   : > { %2222 = vmatprep.subr.bf16.mxu0 %v2560_v52  ;;  %v2612_v52 = vld [vmem:[#allocation4 + $0x340] sm:$0xff]  }
  0x92   : > { %2243 = vmatpush3.bf16.msra.mxu1 %v2559_v51  ;;  %v297_v51 = vpack.c.bf16 %v279_v50, %v279_v50  ;;  %v287_v50 = vld [vmem:[%s2978_s30 + $0x80] sm:$0xff] }
  0x93   : > { %2244 = vmatprep.subr.bf16.mxu1 %v2562_v54 }
  0x94   : > { %2223 = vmatpush3.bf16.msra.mxu0 %v2561_v53  ;;  %v282_v53 = vld [vmem:[%s2978_s30 + $0x58] sm:$0xff] }
  0x95   : > { %2224 = vmatprep.subr.bf16.mxu0 %v2564_v56  ;;  %v300_v54 = vpack.c.bf16 %v282_v53, %v282_v53  ;;  %v281_v56 = vld [vmem:[%s2978_s30 + $0x50] sm:$0xff]  ;;  %v1828_v53 = vld [vmem:[#allocation6 + $0x8] sm:$0xff] }
  0x96   : > { %2245 = vmatpush3.bf16.msra.mxu1 %v2563_v55  ;;  %v2613_v55 = vld [vmem:[#allocation4 + $0x300] sm:$0xff]  }
  0x97   : > { %2246 = vmatprep.subr.bf16.mxu1 %v2566_v58  ;;  %v2614_v58 = vld [vmem:[#allocation4 + $0x3c0] sm:$0xff]  }
  0x98   : > { %2225 = vmatpush3.bf16.msra.mxu0 %v2565_v57  ;;  %v299_v57 = vpack.c.bf16 %v281_v56, %v281_v56 }
  0x99   : > { %2226 = vmatprep.subr.bf16.mxu0 %v2568_v60  ;;  %v2616_v60 = vld [vmem:[#allocation4 + $0x348] sm:$0xff]  }
  0x9a   : > { %2247 = vmatpush3.bf16.msra.mxu1 %v2567_v59  ;;  %v2615_v59 = vld [vmem:[#allocation4 + $0x380] sm:$0xff]  }
  0x9b   : > { %2248 = vmatprep.subr.bf16.mxu1 %v2570_v62  ;;  %v2618_v62 = vld [vmem:[#allocation4 + $0x3c8] sm:$0xff]  }
  0x9c   : > { %2227 = vmatpush3.bf16.msra.mxu0 %v2569_v61  ;;  %v2617_v61 = vld [vmem:[#allocation4 + $0x308] sm:$0xff]  }
  0x9d   : > { %2228 = vmatprep.subr.bf16.mxu0 %v2572_v0  ;;  %v2620_v0 = vld [vmem:[#allocation4 + $0x350] sm:$0xff]  }
  0x9e   : > { %2249 = vmatpush3.bf16.msra.mxu1 %v2571_v63  ;;  %v2619_v63 = vld [vmem:[#allocation4 + $0x388] sm:$0xff]  }
  0x9f   : > { %2250 = vmatprep.subr.bf16.mxu1 %v2574_v2  ;;  %v2622_v2 = vld [vmem:[#allocation4 + $0x3d0] sm:$0xff]  }
  0xa0   : > { %2229 = vmatpush3.bf16.msra.mxu0 %v2573_v1  ;;  %v2621_v1 = vld [vmem:[#allocation4 + $0x310] sm:$0xff]  }
  0xa1   : > { %2230 = vmatprep.subr.bf16.mxu0 %v2576_v4  ;;  %v2624_v4 = vld [vmem:[#allocation4 + $0x358] sm:$0xff]  }
  0xa2   : > { %2251 = vmatpush3.bf16.msra.mxu1 %v2575_v3  ;;  %v2623_v3 = vld [vmem:[#allocation4 + $0x390] sm:$0xff]  }
  0xa3   : > { %2252 = vmatprep.subr.bf16.mxu1 %v2578_v6  ;;  %v2626_v6 = vld [vmem:[#allocation4 + $0x3d8] sm:$0xff]  }
  0xa4   : > { %2231 = vmatpush3.bf16.msra.mxu0 %v2577_v5  ;;  %v2625_v5 = vld [vmem:[#allocation4 + $0x318] sm:$0xff]  }
  0xa5   : > { %2260 = vmatprep.subr.bf16.mxu0 %v2580_v12  ;;  %v2632_v12 = vld [vmem:[#allocation4 + $0x368] sm:$0xff]  }
  0xa6   : > { %2253 = vmatpush3.bf16.msra.mxu1 %v2579_v9  ;;  %v2629_v9 = vld [vmem:[#allocation4 + $0x320] sm:$0xff]  }
  0xa7   : > { %1579 = vmatmul.mubr.bf16.vlgmr.msra.gmra.mrb[4].mxu0 %v293_v11  ;;  %2282 = vmatprep.subr.bf16.mxu1 %v2582_v18  ;;  %v2631_v11 = vld [vmem:[#allocation4 + $0x3a0] sm:$0xff]   ;;  %v2638_v18 = vld [vmem:[#allocation4 + $0x3f0] sm:$0xff]  }
  0xa8   : > { %2261 = vmatpush3.bf16.msra.mxu0 %v2581_v15  ;;  %1658 = vmatprep.mubr.bf16.mxu0 %v298_v48  ;;  %v2635_v15 = vld [vmem:[#allocation4 + $0x3a8] sm:$0xff]   ;;  %v2658_v48 = vld [vmem:[#allocation4 + $0x478] sm:$0xff]  }
  0xa9   : > { %1619 = vmatmul.mubr.bf16.vlgmr.msra.gmra.mrb[4].mxu1 %v295_v17  ;;  %2262 = vmatprep.subr.bf16.mxu0 %v2584_v20  ;;  %v2637_v17 = vld [vmem:[#allocation4 + $0x330] sm:$0xff]   ;;  %v2640_v20 = vld [vmem:[#allocation4 + $0x378] sm:$0xff]  }
  0xaa   : > { %2283 = vmatpush3.bf16.msra.mxu1 %v2583_v19  ;;  %1698 = vmatprep.mubr.bf16.mxu1 %v300_v54  ;;  %v2639_v19 = vld [vmem:[#allocation4 + $0x3b0] sm:$0xff]  }
  0xab   : > { %2284 = vmatprep.subr.bf16.mxu1 %v2586_v22  ;;  %v2642_v22 = vld [vmem:[#allocation4 + $0x3f8] sm:$0xff]   ;;  %v1829_v54 = vld [vmem:[#allocation6 + $0x10] sm:$0xff] }
  0xac   : > { %2263 = vmatpush3.bf16.msra.mxu0 %v2585_v21  ;;  %v2641_v21 = vld [vmem:[#allocation4 + $0x338] sm:$0xff]  }
  0xad   : > { %2264 = vmatprep.subr.bf16.mxu0 %v2588_v24 }
  0xae   : > { %2285 = vmatpush3.bf16.msra.mxu1 %v2587_v23  ;;  %v284_v23 = vld [vmem:[%s2978_s30 + $0x68] sm:$0xff] }
  0xaf   : > { %2286 = vmatprep.subr.bf16.mxu1 %v2590_v26  ;;  %v302_v24 = vpack.c.bf16 %v284_v23, %v284_v23  ;;  %v283_v26 = vld [vmem:[%s2978_s30 + $0x60] sm:$0xff]  ;;  %v2801_v23 = vmov 0.0  }
  0xb0   : > { %2265 = vmatpush3.bf16.msra.mxu0 %v2589_v25  ;;  %v2643_v25 = vld [vmem:[#allocation4 + $0x3b8] sm:$0xff]  }
  0xb1   : > { %2266 = vmatprep.subr.bf16.mxu0 %v2592_v28  ;;  %v2644_v28 = vld [vmem:[#allocation4 + $0x440] sm:$0xff]  }
  0xb2   : > { %2287 = vmatpush3.bf16.msra.mxu1 %v2591_v27  ;;  %v301_v27 = vpack.c.bf16 %v283_v26, %v283_v26 }
  0xb3   : > { %2288 = vmatprep.subr.bf16.mxu1 %v2594_v30 }
  0xb4   : > { %2267 = vmatpush3.bf16.msra.mxu0 %v2593_v29  ;;  %v286_v29 = vld [vmem:[%s2978_s30 + $0x78] sm:$0xff] }
  0xb5   : > { %2268 = vmatprep.subr.bf16.mxu0 %v2596_v32  ;;  %v304_v30 = vpack.c.bf16 %v286_v29, %v286_v29  ;;  %v285_v32 = vld [vmem:[%s2978_s30 + $0x70] sm:$0xff] }
  0xb6   : > { %2289 = vmatpush3.bf16.msra.mxu1 %v2595_v31  ;;  %v2645_v31 = vld [vmem:[#allocation4 + $0x400] sm:$0xff]  }
  0xb7   : > { %2290 = vmatprep.subr.bf16.mxu1 %v2598_v34  ;;  %v2646_v34 = vld [vmem:[#allocation4 + $0x448] sm:$0xff]  }
  0xb8   : > { %2269 = vmatpush3.bf16.msra.mxu0 %v2597_v33  ;;  %v303_v33 = vpack.c.bf16 %v285_v32, %v285_v32 }
  0xb9   : > { %2270 = vmatprep.subr.bf16.mxu0 %v2600_v36  ;;  %v2648_v36 = vld [vmem:[#allocation4 + $0x450] sm:$0xff]  }
  0xba   : > { %2291 = vmatpush3.bf16.msra.mxu1 %v2599_v35  ;;  %v2647_v35 = vld [vmem:[#allocation4 + $0x408] sm:$0xff]  }
  0xbb   : > { %2292 = vmatprep.subr.bf16.mxu1 %v2602_v38  ;;  %v2650_v38 = vld [vmem:[#allocation4 + $0x458] sm:$0xff]  }
  0xbc   : > { %2271 = vmatpush3.bf16.msra.mxu0 %v2601_v37  ;;  %v2649_v37 = vld [vmem:[#allocation4 + $0x410] sm:$0xff]  }
  0xbd   : > { %2272 = vmatprep.subr.bf16.mxu0 %v2604_v40  ;;  %v2652_v40 = vld [vmem:[#allocation4 + $0x460] sm:$0xff]  }
  0xbe   : > { %2293 = vmatpush3.bf16.msra.mxu1 %v2603_v39  ;;  %v2651_v39 = vld [vmem:[#allocation4 + $0x418] sm:$0xff]  }
  0xbf   : > { %2294 = vmatprep.subr.bf16.mxu1 %v2606_v42  ;;  %v2654_v42 = vld [vmem:[#allocation4 + $0x468] sm:$0xff]  }
  0xc0   : > { %2273 = vmatpush3.bf16.msra.mxu0 %v2605_v41  ;;  %v2653_v41 = vld [vmem:[#allocation4 + $0x420] sm:$0xff]  }
  0xc1   : > { %2274 = vmatprep.subr.bf16.mxu0 %v2608_v44 }
  0xc2   : > { %2295 = vmatpush3.bf16.msra.mxu1 %v2607_v43  ;;  %v288_v43 = vld [vmem:[%s2978_s30 + $0x88] sm:$0xff] }
  0xc3   : > { %2296 = vmatprep.subr.bf16.mxu1 %v2610_v46  ;;  %v306_v44 = vpack.c.bf16 %v288_v43, %v288_v43  ;;  %v2656_v46 = vld [vmem:[#allocation4 + $0x470] sm:$0xff]  }
  0xc4   : > { %2275 = vmatpush3.bf16.msra.mxu0 %v2609_v45  ;;  %v2655_v45 = vld [vmem:[#allocation4 + $0x428] sm:$0xff]  }
  0xc5   : > { %2304 = vmatprep.subr.bf16.mxu0 %v2612_v52  ;;  %v1827_v52 = vld [vmem:[#allocation6] sm:$0xff] }
  0xc6   : > { %2297 = vmatpush3.bf16.msra.mxu1 %v2611_v49  ;;  %v2659_v49 = vld [vmem:[#allocation4 + $0x438] sm:$0xff]   ;;  %v2423_v56 = vpack.c.bf16 %v1828_v53, %v1827_v52 }
  0xc7   : > { %1659 = vmatmul.mubr.bf16.vlgmr.msra.gmra.mrb[8].mxu0 %v297_v51  ;;  %2326 = vmatprep.subr.bf16.mxu1 %v2614_v58  ;;  %v305_v51 = vpack.c.bf16 %v287_v50, %v287_v50 }
  0xc8   : > { %2305 = vmatpush3.bf16.msra.mxu0 %v2613_v55  ;;  %1738 = vmatprep.mubr.bf16.mxu0 %v302_v24  ;;  %v2799_v55 = vmov 0.0|0.0   ;;  %v1841_v24 = vld [vmem:[#allocation6 + $0x70] sm:$0xff] }
  0xc9   : > { %1699 = vmatmul.mubr.bf16.vlgmr.msra.gmra.mrb[8].mxu1 %v299_v57  ;;  %2306 = vmatprep.subr.bf16.mxu0 %v2616_v60  ;;  %v1830_v57 = vld [vmem:[#allocation6 + $0x18] sm:$0xff]  ;;  %v1832_v60 = vld [vmem:[#allocation6 + $0x28] sm:$0xff] }
  0xca   : > { %2327 = vmatpush3.bf16.msra.mxu1 %v2615_v59  ;;  %1778 = vmatprep.mubr.bf16.mxu1 %v304_v30  ;;  %v2426_v58 = vpack.c.bf16 %v1830_v57, %v1829_v54  ;;  %v1831_v59 = vld [vmem:[#allocation6 + $0x20] sm:$0xff] }
  0xcb   : > { %2328 = vmatprep.subr.bf16.mxu1 %v2618_v62  ;;  %v1833_v62 = vld [vmem:[#allocation6 + $0x30] sm:$0xff] }
  0xcc   : > { %2307 = vmatpush3.bf16.msra.mxu0 %v2617_v61  ;;  %v2429_v61 = vpack.c.bf16 %v1832_v60, %v1831_v59 }
  0xcd   : > { %2308 = vmatprep.subr.bf16.mxu0 %v2620_v0 }
  0xce   : > { %2329 = vmatpush3.bf16.msra.mxu1 %v2619_v63  ;;  %v1834_v63 = vld [vmem:[#allocation6 + $0x38] sm:$0xff] }
  0xcf   : > { %2330 = vmatprep.subr.bf16.mxu1 %v2622_v2  ;;  %v2432_v0 = vpack.c.bf16 %v1834_v63, %v1833_v62  ;;  %v2024_v2 = vld [vmem:[%s3032_s2] ss:$0 sm:$0xff] }
  0xd0   : > { %2309 = vmatpush3.bf16.msra.mxu0 %v2621_v1 }
  0xd1   : > { %2310 = vmatprep.subr.bf16.mxu0 %v2624_v4 }
  0xd2   : > { %2331 = vmatpush3.bf16.msra.mxu1 %v2623_v3 }
  0xd3   : > { %2332 = vmatprep.subr.bf16.mxu1 %v2626_v6 }
  0xd4   : > { %2311 = vmatpush3.bf16.msra.mxu0 %v2625_v5 }
  0xd5   : > { %2312 = vmatprep.subr.bf16.mxu0 %v2628_v8 }
  0xd6   : > { %2333 = vmatpush3.bf16.msra.mxu1 %v2627_v7 }
  0xd7   : > { %2334 = vmatprep.subr.bf16.mxu1 %v2630_v10  ;;  %v1835_v10 = vld [vmem:[#allocation6 + $0x40] sm:$0xff] }
  0xd8   : > { %2313 = vmatpush3.bf16.msra.mxu0 %v2629_v9 }
  0xd9   : > { %2314 = vmatprep.subr.bf16.mxu0 %v2632_v12 }
  0xda   : > { %2335 = vmatpush3.bf16.msra.mxu1 %v2631_v11  ;;  %v1836_v11 = vld [vmem:[#allocation6 + $0x48] sm:$0xff] }
  0xdb   : > { %2336 = vmatprep.subr.bf16.mxu1 %v2634_v14  ;;  %v2435_v14 = vpack.c.bf16 %v1836_v11, %v1835_v10 }
  0xdc   : > { %2315 = vmatpush3.bf16.msra.mxu0 %v2633_v13 }
  0xdd   : > { %2316 = vmatprep.subr.bf16.mxu0 %v2636_v16 }
  0xde   : > { %2337 = vmatpush3.bf16.msra.mxu1 %v2635_v15 }
  0xdf   : > { %2338 = vmatprep.subr.bf16.mxu1 %v2638_v18  ;;  %v1838_v18 = vld [vmem:[#allocation6 + $0x58] sm:$0xff] }
  0xe0   : > { %2317 = vmatpush3.bf16.msra.mxu0 %v2637_v17  ;;  %v1837_v17 = vld [vmem:[#allocation6 + $0x50] sm:$0xff] }
  0xe1   : > { %2318 = vmatprep.subr.bf16.mxu0 %v2640_v20  ;;  %v1839_v20 = vld [vmem:[#allocation6 + $0x60] sm:$0xff] }
  0xe2   : > { %2339 = vmatpush3.bf16.msra.mxu1 %v2639_v19  ;;  %v2438_v19 = vpack.c.bf16 %v1838_v18, %v1837_v17 }
  0xe3   : > { %2340 = vmatprep.subr.bf16.mxu1 %v2642_v22 }
  0xe4   : > { %2319 = vmatpush3.bf16.msra.mxu0 %v2641_v21  ;;  %v1840_v21 = vld [vmem:[#allocation6 + $0x68] sm:$0xff] }
  0xe5   : > { %2348 = vmatprep.subr.bf16.mxu0 %v2644_v28  ;;  %v2441_v22 = vpack.c.bf16 %v1840_v21, %v1839_v20 }
  0xe6   : > { %2341 = vmatpush3.bf16.msra.mxu1 %v2643_v25  ;;  %v1842_v25 = vld [vmem:[#allocation6 + $0x78] sm:$0xff] }
  0xe7   : > { %1739 = vmatmul.mubr.bf16.vlgmr.msra.gmra.mrb[12].mxu0 %v301_v27  ;;  %2422 = vmatprep.subr.bf16.mxu1 %v2799_v55  ;;  %v2444_v26 = vpack.c.bf16 %v1842_v25, %v1841_v24 }
  0xe8   : > { %2349 = vmatpush3.bf16.msra.mxu0 %v2645_v31  ;;  %1818 = vmatprep.mubr.bf16.mxu0 %v306_v44 }
  0xe9   : > { %1779 = vmatmul.mubr.bf16.vlgmr.msra.gmra.mrb[12].mxu1 %v303_v33  ;;  %2350 = vmatprep.subr.bf16.mxu0 %v2646_v34 }
  0xea   : > { %2424 = vmatpush3.bf16.msra.mxu1 %v2423_v56  ;;  %2419 = vmatprep.mubr.msk.f32.mxu1 %vm2800_vm0, %v2801_v23 }
  0xeb   : > { %2425 = vmatprep.subr.bf16.mxu1 %v2799_v55 }
  0xec   : > { %2351 = vmatpush3.bf16.msra.mxu0 %v2647_v35 }
  0xed   : > { %2352 = vmatprep.subr.bf16.mxu0 %v2648_v36 }
  0xee   : > { %2427 = vmatpush3.bf16.msra.mxu1 %v2426_v58 }
  0xef   : > { %2428 = vmatprep.subr.bf16.mxu1 %v2799_v55 }
  0xf0   : > { %2353 = vmatpush3.bf16.msra.mxu0 %v2649_v37 }
  0xf1   : > { %2354 = vmatprep.subr.bf16.mxu0 %v2650_v38 }
  0xf2   : > { %2430 = vmatpush3.bf16.msra.mxu1 %v2429_v61 }
  0xf3   : > { %2431 = vmatprep.subr.bf16.mxu1 %v2799_v55 }
  0xf4   : > { %2355 = vmatpush3.bf16.msra.mxu0 %v2651_v39 }
  0xf5   : > { %2356 = vmatprep.subr.bf16.mxu0 %v2652_v40 }
  0xf6   : > { %2433 = vmatpush3.bf16.msra.mxu1 %v2432_v0 }
  0xf7   : > { %2434 = vmatprep.subr.bf16.mxu1 %v2799_v55 }
  0xf8   : > { %2357 = vmatpush3.bf16.msra.mxu0 %v2653_v41 }
  0xf9   : > { %2358 = vmatprep.subr.bf16.mxu0 %v2654_v42 }
  0xfa   : > { %2436 = vmatpush3.bf16.msra.mxu1 %v2435_v14 }
  0xfb   : > { %2437 = vmatprep.subr.bf16.mxu1 %v2799_v55 }
  0xfc   : > { %2359 = vmatpush3.bf16.msra.mxu0 %v2655_v45 }
  0xfd   : > { %2360 = vmatprep.subr.bf16.mxu0 %v2656_v46 }
  0xfe   : > { %2439 = vmatpush3.bf16.msra.mxu1 %v2438_v19 }
  0xff   : > { %2440 = vmatprep.subr.bf16.mxu1 %v2799_v55 }
 0x100   : > { %2361 = vmatpush3.bf16.msra.mxu0 %v2657_v47 }
 0x101   : > { %2362 = vmatprep.subr.bf16.mxu0 %v2658_v48 }
 0x102   : > { %2442 = vmatpush3.bf16.msra.mxu1 %v2441_v22 }
 0x103   : > { %2443 = vmatprep.subr.bf16.mxu1 %v2799_v55 }
 0x104   : > { %2363 = vmatpush3.bf16.msra.mxu0 %v2659_v49 }
 0x106   : > { %2445 = vmatpush3.bf16.msra.mxu1 %v2444_v26 }
 0x107   : > { %1819 = vmatmul.mubr.bf16.vlgmr.msra.gmra.mrb[16].mxu0 %v305_v51 }
 0x15a   : > { %v2188_v1 = vpop.f32.mrb[0].mxu0 }
 0x15b   : > { %v2189_v3 = vpop.f32.mrb[1].mxu0 }
 0x15c   : > { %v2190_v4 = vadd.f32 %v2189_v3, %v2188_v1  ;;  %v2191_v5 = vpop.f32.mrb[2].mxu0  ;;  %v2210_v6 = vpop.f32.mrb[0].mxu1 }
 0x15d   : > { %v2192_v7 = vpop.f32.mrb[3].mxu0  ;;  %v2211_v9 = vpop.f32.mrb[1].mxu1 }
 0x15e   : > { %v1501_v8 = vadd.f32 %v2190_v4, %v2024_v2  ;;  %v2212_v12 = vadd.f32 %v2211_v9, %v2210_v6  ;;  %v2213_v13 = vpop.f32.mrb[2].mxu1  ;;  %v2169_v6 = vld [vmem:[%s3034_s4] ss:$0 sm:$0xff] }
 0x15f   : > { %v2214_v15 = vpop.f32.mrb[3].mxu1 }
 0x160   : > { %v1541_v16 = vadd.f32 %v2212_v12, %v1501_v8 }
 0x17a   : > { %v2232_v27 = vpop.f32.mrb[4].mxu0 }
 0x17b   : > { %v2233_v28 = vpop.f32.mrb[5].mxu0 }
 0x17c   : > { %v2234_v29 = vadd.f32 %v2233_v28, %v2232_v27  ;;  %v2235_v30 = vpop.f32.mrb[6].mxu0  ;;  %v2254_v31 = vpop.f32.mrb[4].mxu1 }
 0x17d   : > { %v2236_v32 = vpop.f32.mrb[7].mxu0  ;;  %v2255_v34 = vpop.f32.mrb[5].mxu1 }
 0x17e   : > { %v1581_v33 = vadd.f32 %v2234_v29, %v1541_v16  ;;  %v2256_v35 = vadd.f32 %v2255_v34, %v2254_v31  ;;  %v2257_v36 = vpop.f32.mrb[6].mxu1 }
 0x17f   : > { %v2258_v37 = vpop.f32.mrb[7].mxu1 }
 0x180   : > { %v1621_v38 = vadd.f32 %v2256_v35, %v1581_v33 }
 0x19a   : > { %v2276_v39 = vpop.f32.mrb[8].mxu0 }
 0x19b   : > { %v2277_v40 = vpop.f32.mrb[9].mxu0 }
 0x19c   : > { %v2278_v41 = vadd.f32 %v2277_v40, %v2276_v39  ;;  %v2279_v42 = vpop.f32.mrb[10].mxu0  ;;  %v2298_v43 = vpop.f32.mrb[8].mxu1 }
 0x19d   : > { %v2280_v44 = vpop.f32.mrb[11].mxu0  ;;  %v2299_v45 = vpop.f32.mrb[9].mxu1 }
 0x19e   : > { %v1661_v46 = vadd.f32 %v2278_v41, %v1621_v38  ;;  %v2300_v47 = vadd.f32 %v2299_v45, %v2298_v43  ;;  %v2301_v48 = vpop.f32.mrb[10].mxu1 }
 0x19f   : > { %v2302_v49 = vpop.f32.mrb[11].mxu1 }
 0x1a0   : > { %v1701_v50 = vadd.f32 %v2300_v47, %v1661_v46 }
 0x1ba   : > { %v2320_v51 = vpop.f32.mrb[12].mxu0 }
 0x1bb   : > { %v2321_v52 = vpop.f32.mrb[13].mxu0 }
 0x1bc   : > { %v2322_v53 = vadd.f32 %v2321_v52, %v2320_v51  ;;  %v2323_v54 = vpop.f32.mrb[14].mxu0  ;;  %v2342_v55 = vpop.f32.mrb[12].mxu1 }
 0x1bd   : > { %v2324_v56 = vpop.f32.mrb[15].mxu0  ;;  %v2343_v58 = vpop.f32.mrb[13].mxu1 }
 0x1be   : > { %v1741_v57 = vadd.f32 %v2322_v53, %v1701_v50  ;;  %v2344_v59 = vadd.f32 %v2343_v58, %v2342_v55  ;;  %v2345_v60 = vpop.f32.mrb[14].mxu1 }
 0x1bf   : > { %v2346_v61 = vpop.f32.mrb[15].mxu1 }
 0x1c0   : > { %v1781_v62 = vadd.f32 %v2344_v59, %v1741_v57 }
 0x1da   : > { %v2364_v63 = vpop.f32.mrb[16].mxu0 }
 0x1db   : > { %v2365_v0 = vpop.f32.mrb[17].mxu0 }
 0x1dc   : > { %v2366_v1 = vadd.f32 %v2365_v0, %v2364_v63  ;;  %v2367_v2 = vpop.f32.mrb[18].mxu0 }
 0x1dd   : > { %v2368_v3 = vpop.f32.mrb[19].mxu0 }
 0x1de   : > { %v1821_v4 = vadd.f32 %v2366_v1, %v1781_v62 }
 0x1e0   : > { %2660 = vtanh.f32 %v1821_v4 }
 0x1ea   : > { %v2661_v5 = vpop.eup %2660 }
 0x1eb   : > { %2420 = vmatmul.mubr.f32.vlgmr.msra.gmra.mrb[16].mxu1 %v2661_v5 }
 0x2be   : > { %v1916_v7 = vpop.f32.mrb[16].mxu1 }
 0x2bf   : > { %v1917_v8 = vadd.f32 %v2169_v6, %v1916_v7  ;;  %v2421_v9 = vpop.f32.mrb[17].mxu1 }
 0x2c1   : > { %1920 = vmax.xlane.f32.xlu0 %v1917_v8 }
 0x34e   : > { %v1921_v10 = vpop.xlane.xlu0 %1920 }
 0x34f   : > { %v1922_v11 = vsub.f32 %v1917_v8, %v1921_v10 }
 0x351   : > { %v1923_v12 = vmul.f32 1.442695, %v1922_v11 }
 0x353   : > { %2662 = vpow2.f32 %v1923_v12 }
 0x35d   : > { %v2663_v13 = vpop.eup %2662 }
 0x35e   : > { %1925 = vadd.xlane.f32.xlu0 %v2663_v13 }
 0x3eb   : > { %v1926_v14 = vpop.xlane.xlu0 %1925 }
 0x3ec   : > { %2664 = vrcp.f32 %v1926_v14 }
 0x3f6   : > { %v2665_v15 = vpop.eup %2664 }
 0x3f7   : > { %v1928_v16 = vmul.f32 %v2665_v15, %v2663_v13 }
 0x3f9   : > { %1929 = vst [vmem:[%s269_s26] sm:$0xff] %v1928_v16 }
 0x3fa PF: > { %p16_p9 = scmp.ge.s32.totalorder %s2925_s12, 4   ;;  %s3047_s18 = smov %s2782_s19 }
 0x3fb   : > { %s3048_s19 = smov %s2786_s20  ;;  %s3049_s20 = smov %s2934_s15 }
 0x3fc   : > { %s3050_s21 = smov %s2925_s12  ;;  %18 = sbr.rel (!%p16_p9) target bundleno = 4 (0x4), region = 88 }
 0x403   :  { %1949 = vsyncpa [#allocation3], 1 }
 0x404   :  { %1951 = vsyncpa [#allocation3 + $0x1], 1 }
 0x405   :  { %1952 = vsyncpa [#allocation5], 1 }

</bundles_post_ra>
